<compile_context>
chip_gen: v6e
topology: v6e:2x2x1
jax: 0.10.0
libtpu: 0.0.40
codegen_flags: <defaults>
</compile_context>

<pallas_src>
import functools

import jax
import jax.numpy as jnp
from jax.experimental import pallas as pl
from jax.experimental.pallas import tpu as pltpu


def _cdiv(a, b):
    return -(-a // b)


def _vmem_budget():
    """(per-input-buffer byte target, vmem_limit_bytes) per TPU generation."""
    try:
        vmem = int(pltpu.get_tpu_info().vmem_capacity_bytes)
    except Exception:
        vmem = 0
    if vmem >= 100 * 1024 * 1024:           # v5e / v6e: 128 MiB physical VMEM
        return 24 * 1024 * 1024, 96 * 1024 * 1024
    if vmem >= 48 * 1024 * 1024:            # v7x: 64 MiB physical VMEM
        return 12 * 1024 * 1024, 48 * 1024 * 1024
    # Unknown hardware / query failed: stay within the universal 32 MiB default.
    return 8 * 1024 * 1024, 32 * 1024 * 1024


def _pick_dim(extent, cap, quantum):
    """Tile for a non-reduction axis: full extent if it fits, else the largest
    quantum-aligned divisor <= cap, else the largest quantum-aligned size <= cap
    (the grid then uses cdiv; padded edge blocks are discarded on writeback)."""
    if extent <= cap:
        return extent
    best = max(quantum, (cap // quantum) * quantum)
    t = best
    while t >= quantum:
        if extent % t == 0:
            return t
        t -= quantum
    return best


def _pick_tiles(n, c, hw, budget_elems):
    """Pick (tn, tc, thw) for an input block of <= budget_elems elements."""
    min_tn = n if n < 8 else 8          # output 2nd-minor dim: mult of 8 or full N
    min_tc = c if c < 128 else 128      # output minor dim:     mult of 128 or full C

    if min_tn * min_tc * hw <= budget_elems:
        # Preferred: one fully contiguous (tn, tc, H*W) slab per block.
        thw = hw
        # Bound the row count so the (tn, tc) accumulator / output double
        # buffers stay small even for tiny spatial extents.
        row_budget = max(min_tn * min_tc, budget_elems // max(hw, 16))
        tc = _pick_dim(c, max(min_tc, row_budget // min_tn), 128)
        tn = _pick_dim(n, max(min_tn, row_budget // tc), 8)
    else:
        # H*W must be tiled: minimal row count -> longest contiguous run per row.
        tn, tc = min_tn, min_tc
        thw = max(128, (budget_elems // (tn * tc) // 128) * 128)
        thw = min(thw, hw)
    return tn, tc, thw


def _ensure_parallel_split(n, c, tn, tc):
    """v7x has 2 TensorCores: make sure the 'parallel' axes have >= 2 blocks
    whenever an aligned split exists (negligible cost on single-core chips)."""
    if _cdiv(n, tn) * _cdiv(c, tc) >= 2:
        return tn, tc
    if c >= 256:
        tc = _pick_dim(c, c // 2, 128)
    elif n >= 16:
        tn = _pick_dim(n, n // 2, 8)
    return tn, tc


def _gap_kernel(x_ref, o_ref, acc_ref, *, inv_hw, hw, thw, sum_chunk, mask_tail):
    """x_ref: (TN, TC, THW) tile; o_ref: (TN, TC); acc_ref: (TN, TC) f32 scratch."""
    k = pl.program_id(2)
    last_k = pl.num_programs(2) - 1

    @pl.when(k == 0)
    def _init():
        acc_ref[...] = jnp.zeros_like(acc_ref)

    def accumulate(apply_mask):
        # Partial spatial sum of this block, accumulated in f32 (torch .mean
        # parity).  Summed in lane-aligned sub-chunks so the f32 upcast temp
        # stays far smaller than the input block.
        base = k * thw
        total = jnp.zeros(acc_ref.shape, jnp.float32)
        for s in range(0, thw, sum_chunk):
            size = min(sum_chunk, thw - s)
            chunk = x_ref[:, :, s:s + size].astype(jnp.float32)
            if apply_mask:
                lane = jax.lax.broadcasted_iota(jnp.int32, chunk.shape, 2)
                chunk = jnp.where(base + s + lane < hw, chunk, 0.0)
            total = total + jnp.sum(chunk, axis=-1)
        acc_ref[...] += total

    if mask_tail:
        # Only the last reduction step can read past H*W; keep the hot path
        # completely mask-free.
        @pl.when(k < last_k)
        def _body():
            accumulate(False)

        @pl.when(k == last_k)
        def _tail():
            accumulate(True)
    else:
        accumulate(False)

    @pl.when(k == last_k)
    def _finalize():
        # Divide by the FULL H*W (not the per-chunk size) and cast back.
        o_ref[...] = (acc_ref[...] * inv_hw).astype(o_ref.dtype)


def global_avg_pool2d(x, *, per_buffer_bytes=None, vmem_limit_bytes=None):
    """Global average pooling over spatial dims. x: (N, C, H, W) -> (N, C)."""
    n, c, h, w = x.shape
    hw = h * w
    x3 = x.reshape(n, c, hw)                       # free reshape (NCHW contiguous)

    auto_buf, auto_limit = _vmem_budget()
    per_buffer_bytes = per_buffer_bytes or auto_buf
    vmem_limit_bytes = vmem_limit_bytes or auto_limit
    itemsize = jnp.dtype(x.dtype).itemsize
    budget_elems = max(per_buffer_bytes // itemsize, 8 * 128)

    tn, tc, thw = _pick_tiles(n, c, hw, budget_elems)
    tn, tc = _ensure_parallel_split(n, c, tn, tc)

    grid = (_cdiv(n, tn), _cdiv(c, tc), _cdiv(hw, thw))
    mask_tail = (hw % thw) != 0

    # Lane-aligned sub-chunk size for the in-kernel f32 accumulation.
    if thw <= 4096:
        sum_chunk = thw
    else:
        sum_chunk = _cdiv(_cdiv(thw, 8), 128) * 128

    kernel = functools.partial(
        _gap_kernel, inv_hw=1.0 / hw, hw=hw, thw=thw,
        sum_chunk=sum_chunk, mask_tail=mask_tail)

    return pl.pallas_call(
        kernel,
        out_shape=jax.ShapeDtypeStruct((n, c), x.dtype),
        grid=grid,
        in_specs=[pl.BlockSpec((tn, tc, thw), lambda i, j, k: (i, j, k))],
        # Output block revisited across the spatial (k) axis, written only on
        # the last step; channels sit on lanes (lane-dense when tc % 128 == 0).
        out_specs=pl.BlockSpec((tn, tc), lambda i, j, k: (i, j)),
        scratch_shapes=[pltpu.VMEM((tn, tc), jnp.float32)],
        compiler_params=pltpu.CompilerParams(
            dimension_semantics=("parallel", "parallel", "arbitrary"),
            vmem_limit_bytes=vmem_limit_bytes,
        ),
    )(x3)


def _ref_gap(x):
    n, c = x.shape[0], x.shape[1]
    return x.reshape(n, c, -1).astype(jnp.float32).mean(axis=2).astype(x.dtype)


if __name__ == "__main__":
    key = jax.random.PRNGKey(0)
    k1, k2, k3, k4, k5 = jax.random.split(key, 5)

    # 1) Canonical small shape: single contiguous full-H*W block.
    x1 = jax.random.normal(k1, (2, 4, 16, 16), dtype=jnp.float32)
    o1 = global_avg_pool2d(x1)
    jax.block_until_ready(o1)
    assert o1.shape == (2, 4) and o1.dtype == x1.dtype
    assert jnp.allclose(o1, _ref_gap(x1), atol=1e-5, rtol=1e-5)

    # 2) Larger spatial extent, default budget: still a full-H*W slab.
    x2 = jax.random.normal(k2, (2, 8, 64, 64), dtype=jnp.float32)
    o2 = global_avg_pool2d(x2)
    jax.block_until_ready(o2)
    assert o2.shape == (2, 8) and o2.dtype == x2.dtype
    assert jnp.allclose(o2, _ref_gap(x2), atol=1e-5, rtol=1e-5)

    # 3) Forced-tiny budget + H*W with no 128-aligned divisor (60*60=3600):
    #    exercises H*W tiling, f32 accumulator carry, and the masked ragged tail.
    x3 = jax.random.normal(k3, (2, 4, 60, 60), dtype=jnp.float32)
    o3 = global_avg_pool2d(x3, per_buffer_bytes=16 * 1024)
    jax.block_until_ready(o3)
    assert o3.shape == (2, 4) and o3.dtype == x3.dtype
    assert jnp.allclose(o3, _ref_gap(x3), atol=1e-5, rtol=1e-5)

    # 4) Forced-tiny budget with exactly dividing H*W: unmasked multi-step carry.
    x4 = jax.random.normal(k4, (2, 8, 32, 32), dtype=jnp.float32)
    o4 = global_avg_pool2d(x4, per_buffer_bytes=8 * 1024)
    jax.block_until_ready(o4)
    assert o4.shape == (2, 8) and o4.dtype == x4.dtype
    assert jnp.allclose(o4, _ref_gap(x4), atol=1e-5, rtol=1e-5)

    # 5) bf16 with channels % 128 == 0: f32-accumulate + cast-back, lane-dense
    #    channel output blocks, and the >= 2-parallel-blocks split (v7x 2 TCs).
    x5 = jax.random.normal(k5, (2, 256, 4, 4), dtype=jnp.bfloat16)
    o5 = global_avg_pool2d(x5)
    jax.block_until_ready(o5)
    assert o5.shape == (2, 256) and o5.dtype == x5.dtype
    assert jnp.allclose(o5.astype(jnp.float32), _ref_gap(x5).astype(jnp.float32),
                        atol=2e-2, rtol=2e-2)

    print("KERNEL_OK")
</pallas_src>

<mosaic_0001>
module attributes {stable_mosaic.version = 11 : i64} {
  func.func @_gap_kernel(%arg0: i32, %arg1: i32, %arg2: i32, %arg3: memref<2x4x256xf32, #tpu.memory_space<vmem>>, %arg4: memref<2x4xf32, #tpu.memory_space<vmem>>, %arg5: memref<2x4xf32, #tpu.memory_space<vmem>>) attributes {dimension_semantics = [#tpu.dimension_semantics<parallel>, #tpu.dimension_semantics<parallel>, #tpu.dimension_semantics<arbitrary>], iteration_bounds = array<i64: 1, 1, 1>, scalar_prefetch = 0 : i64, scratch_operands = 1 : i64, tpu.core_type = #tpu.core_type<tc>, window_params = [{transform_indices = @transform_0, window_bounds = array<i64: 2, 4, 256>}, {transform_indices = @transform_1, window_bounds = array<i64: 2, 4>}]} {
    %c0_i32 = arith.constant 0 : i32
    %0 = arith.cmpi eq, %arg2, %c0_i32 : i32
    %1 = arith.extui %0 : i1 to i32
    %c0_i32_0 = arith.constant 0 : i32
    %2 = arith.cmpi ne, %1, %c0_i32_0 : i32
    scf.if %2 {
      %cst_10 = arith.constant 0.000000e+00 : f32
      %13 = vector.broadcast %cst_10 : f32 to vector<2x4xf32>
      %c0_11 = arith.constant 0 : index
      %c0_12 = arith.constant 0 : index
      %14 = vector.load %arg5[%c0_11, %c0_12] : memref<2x4xf32, #tpu.memory_space<vmem>>, vector<2x4xf32>
      tpu.vector_store %arg5[%c0_11, %c0_12], %13 {strides = array<i32>} : memref<2x4xf32, #tpu.memory_space<vmem>>, vector<2x4xf32>,
    } else {
    }
    %cst = arith.constant 0.000000e+00 : f32
    %3 = vector.broadcast %cst : f32 to vector<2x4xf32>
    %c0 = arith.constant 0 : index
    %c0_1 = arith.constant 0 : index
    %c0_2 = arith.constant 0 : index
    %4 = vector.load %arg3[%c0, %c0_1, %c0_2] : memref<2x4x256xf32, #tpu.memory_space<vmem>>, vector<2x4x256xf32>
    %cst_3 = arith.constant dense<0.000000e+00> : vector<2x4xf32>
    %5 = vector.multi_reduction <add>, %4, %cst_3 [2] : vector<2x4x256xf32> to vector<2x4xf32>
    %6 = arith.addf %3, %5 : vector<2x4xf32>
    %c0_4 = arith.constant 0 : index
    %c0_5 = arith.constant 0 : index
    %7 = vector.load %arg5[%c0_4, %c0_5] : memref<2x4xf32, #tpu.memory_space<vmem>>, vector<2x4xf32>
    %8 = arith.addf %7, %6 : vector<2x4xf32>
    %c0_6 = arith.constant 0 : index
    %c0_7 = arith.constant 0 : index
    %9 = vector.load %arg5[%c0_6, %c0_7] : memref<2x4xf32, #tpu.memory_space<vmem>>, vector<2x4xf32>
    tpu.vector_store %arg5[%c0_6, %c0_7], %8 {strides = array<i32>} : memref<2x4xf32, #tpu.memory_space<vmem>>, vector<2x4xf32>,
    %c0_i32_8 = arith.constant 0 : i32
    %10 = arith.cmpi eq, %arg2, %c0_i32_8 : i32
    %11 = arith.extui %10 : i1 to i32
    %c0_i32_9 = arith.constant 0 : i32
    %12 = arith.cmpi ne, %11, %c0_i32_9 : i32
    scf.if %12 {
      %c0_10 = arith.constant 0 : index
      %c0_11 = arith.constant 0 : index
      %13 = vector.load %arg5[%c0_10, %c0_11] : memref<2x4xf32, #tpu.memory_space<vmem>>, vector<2x4xf32>
      %cst_12 = arith.constant 3.906250e-03 : f32
      %14 = vector.broadcast %cst_12 : f32 to vector<2x4xf32>
      %15 = arith.mulf %13, %14 : vector<2x4xf32>
      %c0_13 = arith.constant 0 : index
      %c0_14 = arith.constant 0 : index
      %16 = vector.load %arg4[%c0_13, %c0_14] : memref<2x4xf32, #tpu.memory_space<vmem>>, vector<2x4xf32>
      tpu.vector_store %arg4[%c0_13, %c0_14], %15 {strides = array<i32>} : memref<2x4xf32, #tpu.memory_space<vmem>>, vector<2x4xf32>,
    } else {
    }
    return
  }
  func.func @transform_0(%arg0: i32, %arg1: i32, %arg2: i32) -> (i32, i32, i32) {
    %c0_i32 = arith.constant 0 : i32
    return %arg0, %arg1, %arg2 : i32, i32, i32
  }
  func.func @transform_1(%arg0: i32, %arg1: i32, %arg2: i32) -> (i32, i32) {
    %c0_i32 = arith.constant 0 : i32
    return %arg0, %arg1 : i32, i32
  }
}

</mosaic_0001>

<bundles_post_ra>
// kernel: tpu_custom_call.1
= control target key start
LH: loop header
LB: loop body
LE: loop exit
PB: predicated region body
PF: predicated region fallthrough
CT: control target
= control target key end

     0   :  { %6 = vsyncpa [#allocation4], 0  ;;  %s165_s0 = inlined_call_operand.hbm [shape: f32[2,4,256], index: 0, kind: input, shape index: {}]   ;;  %s166_s1 = inlined_call_operand.hbm [shape: f32[2,4], index: 1, kind: output, shape index: {}]  }
   0x1   :  { %7 = vsyncpa [#allocation5], 0  ;;  %s141_s6 = smov [#allocation3]  }
   0x2   :  { %s13_s7 = sshll.u32 %s141_s6, 4  ;;  %s14_s7 = int_to_ptr.vmem [resolvable:$true] %s13_s7 }
   0x3   :  { %s105_s8 = scalar_lea.vmem %s14_s7, 256  ;;  %p110_p1 = scmp.lt.s32.totalorder %s14_s7, %s14_s7 }
   0x4   :  { %p106_p0 = scmp.ne.s32.totalorder %s14_s7, %s105_s8  ;;  %p111_p2 = scmp.lt.s32.totalorder %s105_s8, %s105_s8 }
   0x6   :  { %p112_p3 = por %p111_p2, %p110_p1 }
   0x8   :  { %p113_p4 = pnand %p112_p3, %p106_p0 }
   0xa   :  { %116 = shalt.err (!%p113_p4)
}
   0xb   :  { %s142_s9 = smov 128   ;;  %s143_s10 = smov 8  }
   0xc   :  { %19 = dma.hbm_to_vmem [thread:$0]  %s165_s0, 256, %s14_s7, [#allocation4], %s142_s9, %s142_s9, %s143_s10  }
   0xd   :  { %137 = dma.done.wait [#allocation4], 256  }
   0xe   :  { %138 = vsyncadd [#allocation4], 4294967040  ;;  %vm37_vm0 = vcmask 1043456   ;;  %v29_v0 = vld [vmem:[#allocation3] sm:$0xff]  ;;  %v30_v1 = vld [vmem:[#allocation3 + $0x8] sm:$0xff]  ;;  %vm27_vm1 = vcmask 25600   ;;  %v53_v11 = vlaneseq }
   0xf   :  { %v33_v2 = vcombine.high %v29_v0, %v29_v0  ;;  %v38_v3 = vsel %vm37_vm0, %v29_v0, 0.0  ;;  %v34_v4 = vcombine.high %v30_v1, %v30_v1  ;;  %v43_v6 = vsel %vm37_vm0, %v30_v1, 0.0  ;;  %s145_s0 = smov [#allocation6]  }
  0x10   :  { %v144_v10 = vmov 0.0   ;;  %v54_v12 = vand.u32 127, %v53_v11  ;;  %v56_v13 = vshrl.u32 %v53_v11, 7  ;;  %vm63_vm2 = vcmask 1041409   ;;  %s81_s13 = sshll.u32 %s145_s0, 4  ;;  %s82_s13 = int_to_ptr.vmem [resolvable:$true] %s81_s13 }
  0x11   :  { %v39_v5 = vsel %vm37_vm0, %v33_v2, 0.0  ;;  %v44_v7 = vsel %vm37_vm0, %v34_v4, 0.0  ;;  %28 = vst.msk [vmem:[#allocation2] sm:$0x3] %vm27_vm1, %v144_v10  ;;  %s117_s14 = scalar_lea.vmem %s82_s13, 32  ;;  %p122_p6 = scmp.lt.s32.totalorder %s82_s13, %s82_s13 }
  0x12   :  { %v40_v8 = vadd.f32 %v39_v5, %v38_v3  ;;  %v45_v9 = vadd.f32 %v44_v7, %v43_v6  ;;  %v57_v15 = vsub.s32 %v54_v12, %v56_v13  ;;  %p118_p5 = scmp.ne.s32.totalorder %s82_s13, %s117_s14  ;;  %p123_p7 = scmp.lt.s32.totalorder %s117_s14, %s117_s14 }
  0x14   :  { %41 = vadd.xlane.f32.xlu0 %v40_v8  ;;  %p124_p8 = por %p123_p7, %p122_p6 }
  0x16   :  { %p125_p9 = pnand %p124_p8, %p118_p5 }
  0x18   :  { %46 = vadd.xlane.f32.xlu0 %v45_v9  ;;  %v50_v19 = vld [vmem:[#allocation2] sm:$0x3] }
  0x9d   :  { %v42_v14 = vpop.xlane.xlu0 %41 }
  0x9e   :  { %v58_v17 = vrot.slane %v42_v14, %v57_v15 }
  0xa1   :  { %v47_v16 = vpop.xlane.xlu0 %46 }
  0xa2   :  { %v62_v18 = vrot.slane %v47_v16, %v57_v15 }
  0xa4   :  { %v64_v20 = vsel %vm63_vm2, %v62_v18, %v58_v17 }
  0xa5   :  { %v66_v21 = vadd.f32 %v64_v20, %v50_v19 }
  0xa7   :  { %68 = vst.msk [vmem:[#allocation2] sm:$0x3] %vm27_vm1, %v66_v21 }
  0xae   :  { %v72_v22 = vld [vmem:[#allocation2] sm:$0x3] }
  0xaf   :  { %v73_v23 = vmul.f32 0.00390625, %v72_v22 }
  0xb1   :  { %74 = vst.msk [vmem:[#allocation6] sm:$0x3] %vm27_vm1, %v73_v23 }
  0xb2   :  { %128 = shalt.err (!%p125_p9)
}
  0xb3   :  { %84 = dma.vmem_to_hbm [thread:$0]  %s82_s13, 32, %s166_s1, [#allocation5]  }
  0xb4   :  { %139 = dma.done.wait [#allocation5], 32  }
  0xb5   :  { %140 = vsyncadd [#allocation5], 4294967264 }
  0xb6   :  { %88 = vsyncpa [#allocation4], 1 }
  0xb7   :  { %89 = vsyncpa [#allocation5], 1 }

</bundles_post_ra>
